<compile_context>
chip_gen: v6e
topology: v6e:2x2x1
jax: 0.10.0
libtpu: 0.0.40
codegen_flags: <defaults>
</compile_context>

<pallas_src>
import math
import functools

import jax
import jax.numpy as jnp
from jax.experimental import pallas as pl
from jax.experimental.pallas import tpu as pltpu


def _tile(dim, preferred):
    """Largest tile <= preferred that divides `dim` and is a multiple of 8
    (second-to-last block-dim rule); falls back to the full dim."""
    if dim <= preferred:
        return dim
    t = (preferred // 8) * 8
    while t >= 8:
        if dim % t == 0:
            return t
        t -= 8
    return dim


# ----------------------------------------------------------------------------
# Projection kernel:  y = (x @ W + b) * scale      (W stored (in, out))
# ----------------------------------------------------------------------------
def _linear_kernel(x_ref, w_ref, b_ref, o_ref, *, scale):
    acc = jnp.dot(x_ref[...], w_ref[...], preferred_element_type=jnp.float32)
    acc = acc + b_ref[...]
    if scale != 1.0:
        acc = acc * scale
    o_ref[...] = acc.astype(o_ref.dtype)


def _linear(x2d, w, b, *, scale, out_dtype, block_m=256):
    rows, d_in = x2d.shape
    d_out = w.shape[1]
    tm = _tile(rows, block_m)
    grid = (rows // tm,)
    return pl.pallas_call(
        functools.partial(_linear_kernel, scale=scale),
        out_shape=jax.ShapeDtypeStruct((rows, d_out), out_dtype),
        grid_spec=pltpu.PrefetchScalarGridSpec(
            num_scalar_prefetch=0,
            grid=grid,
            in_specs=[
                pl.BlockSpec((tm, d_in), lambda i: (i, 0)),     # x row-tile
                pl.BlockSpec((d_in, d_out), lambda i: (0, 0)),  # W (resident)
                pl.BlockSpec((1, d_out), lambda i: (0, 0)),     # bias (f32)
            ],
            out_specs=pl.BlockSpec((tm, d_out), lambda i: (i, 0)),
        ),
        compiler_params=pltpu.CompilerParams(
            dimension_semantics=("parallel",),
            vmem_limit_bytes=48 * 1024 * 1024,
        ),
    )(x2d, w, b)


# ----------------------------------------------------------------------------
# Flash-attention kernel over already-projected, head-major Q/K/V.
#   q_ref/k_ref/v_ref blocks: (1, 1, TQ|TK, d_k);  Q is pre-scaled by 1/sqrt(d_k)
#   grid = (B, H, Sq/TQ, Sk/TK), KV axis innermost ("arbitrary").
# ----------------------------------------------------------------------------
def _flash_attn_kernel(q_ref, k_ref, v_ref, o_ref, m_sc, l_sc, acc_sc,
                       *, approx_recip):
    ki = pl.program_id(3)

    @pl.when(ki == 0)
    def _init():
        m_sc[...] = jnp.full(m_sc.shape, -jnp.inf, m_sc.dtype)
        l_sc[...] = jnp.zeros(l_sc.shape, l_sc.dtype)
        acc_sc[...] = jnp.zeros(acc_sc.shape, acc_sc.dtype)

    qh = q_ref[0, 0]          # (TQ, d_k), already scaled
    kh = k_ref[0, 0]          # (TK, d_k)
    vh = v_ref[0, 0]          # (TK, d_k)

    # Contract last dims: (TQ, d_k) x (TK, d_k) -> (TQ, TK); no explicit .T.
    s = jax.lax.dot_general(qh, kh, (((1,), (1,)), ((), ())),
                            preferred_element_type=jnp.float32)

    m_prev = m_sc[...]                                            # (TQ, 1)
    m_new = jnp.maximum(m_prev, jnp.max(s, axis=-1, keepdims=True))
    alpha = jnp.exp(m_prev - m_new)
    p = jnp.exp(s - m_new)                                        # unnormalized
    l_sc[...] = alpha * l_sc[...] + jnp.sum(p, axis=-1, keepdims=True)
    acc_sc[...] = alpha * acc_sc[...] + jnp.dot(
        p.astype(vh.dtype), vh, preferred_element_type=jnp.float32)
    m_sc[...] = m_new

    @pl.when(ki == pl.num_programs(3) - 1)
    def _finalize():
        if approx_recip:
            inv_l = pl.reciprocal(l_sc[...], approx=True)
        else:
            inv_l = 1.0 / l_sc[...]
        o_ref[0, 0] = (acc_sc[...] * inv_l).astype(o_ref.dtype)


def multi_head_attention(q, k, v, params, *, num_heads,
                         block_q=256, block_k=512,
                         compute_dtype=jnp.bfloat16,
                         approx_reciprocal=True):
    """Fused MHA forward (mask=None path of the PyTorch module).

    compute_dtype selects the MXU operand dtype (default bf16); accumulation,
    biases and softmax statistics are always f32.
    """
    B, Sq, D = q.shape
    Sk = k.shape[1]
    assert v.shape[1] == Sk, "k/v sequence lengths must match"
    assert D % num_heads == 0, "d_model must be divisible by num_heads"
    d_k = D // num_heads
    out_dtype = q.dtype
    scale = 1.0 / math.sqrt(d_k)

    wq, bq, wk, bk, wv, bv, wo, bo = params
    cdt = compute_dtype if compute_dtype is not None else q.dtype

    qc, kc, vc = (x.astype(cdt) for x in (q, k, v))
    wq_c, wk_c, wv_c, wo_c = (w.astype(cdt) for w in (wq, wk, wv, wo))
    bq_f, bk_f, bv_f, bo_f = (b.astype(jnp.float32).reshape(1, -1)
                              for b in (bq, bk, bv, bo))

    # --- Projections (hoisted; one pass over the data each).  1/sqrt(d_k) is
    # folded into the Q projection so no per-score scaling happens later.
    qp = _linear(qc.reshape(B * Sq, D), wq_c, bq_f, scale=scale, out_dtype=cdt)
    kp = _linear(kc.reshape(B * Sk, D), wk_c, bk_f, scale=1.0, out_dtype=cdt)
    vp = _linear(vc.reshape(B * Sk, D), wv_c, bv_f, scale=1.0, out_dtype=cdt)

    # Head-major layout so the flash kernel grids over heads with full-d_k
    # (lane-dense, legal) blocks.
    qp = qp.reshape(B, Sq, num_heads, d_k).transpose(0, 2, 1, 3)
    kp = kp.reshape(B, Sk, num_heads, d_k).transpose(0, 2, 1, 3)
    vp = vp.reshape(B, Sk, num_heads, d_k).transpose(0, 2, 1, 3)

    tq = _tile(Sq, block_q)
    tk = _tile(Sk, block_k)
    grid = (B, num_heads, Sq // tq, Sk // tk)

    attn = pl.pallas_call(
        functools.partial(_flash_attn_kernel, approx_recip=approx_reciprocal),
        out_shape=jax.ShapeDtypeStruct((B, num_heads, Sq, d_k), cdt),
        grid_spec=pltpu.PrefetchScalarGridSpec(
            num_scalar_prefetch=0,
            grid=grid,
            in_specs=[
                pl.BlockSpec((1, 1, tq, d_k), lambda b, h, qi, ki: (b, h, qi, 0)),
                pl.BlockSpec((1, 1, tk, d_k), lambda b, h, qi, ki: (b, h, ki, 0)),
                pl.BlockSpec((1, 1, tk, d_k), lambda b, h, qi, ki: (b, h, ki, 0)),
            ],
            out_specs=pl.BlockSpec((1, 1, tq, d_k),
                                   lambda b, h, qi, ki: (b, h, qi, 0)),
            scratch_shapes=[
                pltpu.VMEM((tq, 1), jnp.float32),     # running max
                pltpu.VMEM((tq, 1), jnp.float32),     # running sum
                pltpu.VMEM((tq, d_k), jnp.float32),   # output accumulator
            ],
        ),
        compiler_params=pltpu.CompilerParams(
            dimension_semantics=("parallel", "parallel", "parallel", "arbitrary"),
            vmem_limit_bytes=32 * 1024 * 1024,
        ),
    )(qp, kp, vp)

    # Concat heads (lane-dense (B*Sq, D) slab) + output projection: a single
    # full-D-contraction matmul instead of H small d_k-deep matmuls.
    attn = attn.transpose(0, 2, 1, 3).reshape(B * Sq, D)
    out = _linear(attn, wo_c, bo_f, scale=1.0, out_dtype=out_dtype)
    return out.reshape(B, Sq, D)


def _reference(q, k, v, params, *, num_heads):
    """Pure-JAX reference mirroring the PyTorch forward (mask=None)."""
    wq, bq, wk, bk, wv, bv, wo, bo = params
    B, Sq, D = q.shape
    d_k = D // num_heads

    def proj(x, w, b):
        return x @ w + b[0]

    qp = proj(q, wq, bq).reshape(B, Sq, num_heads, d_k).transpose(0, 2, 1, 3)
    kp = proj(k, wk, bk).reshape(B, k.shape[1], num_heads, d_k).transpose(0, 2, 1, 3)
    vp = proj(v, wv, bv).reshape(B, v.shape[1], num_heads, d_k).transpose(0, 2, 1, 3)

    scores = jnp.einsum("bhqd,bhkd->bhqk", qp, kp) / math.sqrt(d_k)
    p = jax.nn.softmax(scores, axis=-1)
    attn = jnp.einsum("bhqk,bhkd->bhqd", p, vp)
    attn = attn.transpose(0, 2, 1, 3).reshape(B, Sq, D)
    return attn @ wo + bo[0]


if __name__ == "__main__":
    B = 2
    S = 8
    d_model = 32
    num_heads = 4

    key = jax.random.PRNGKey(0)
    keys = jax.random.split(key, 12)

    q = jax.random.normal(keys[0], (B, S, d_model), dtype=jnp.float32)
    k = jax.random.normal(keys[1], (B, S, d_model), dtype=jnp.float32)
    v = jax.random.normal(keys[2], (B, S, d_model), dtype=jnp.float32)

    # Deterministic parameter init (nn.Linear-style uniform bound).
    bound = 1.0 / math.sqrt(d_model)

    def init_linear(wkey, bkey):
        w = jax.random.uniform(wkey, (d_model, d_model), jnp.float32, -bound, bound)
        b = jax.random.uniform(bkey, (1, d_model), jnp.float32, -bound, bound)
        return w, b

    wq, bq = init_linear(keys[3], keys[4])
    wk, bk = init_linear(keys[5], keys[6])
    wv, bv = init_linear(keys[7], keys[8])
    wo, bo = init_linear(keys[9], keys[10])
    params = (wq, bq, wk, bk, wv, bv, wo, bo)

    ref = _reference(q, k, v, params, num_heads=num_heads)

    # Default path: bf16 MXU operands, f32 accumulation / softmax stats.
    out = multi_head_attention(q, k, v, params, num_heads=num_heads)
    out = jax.block_until_ready(out)
    assert out.shape == (B, S, d_model)
    assert jnp.allclose(out, ref, atol=1e-1, rtol=1e-1), "bf16 mismatch vs reference"

    # f32 operand path (tighter tolerance; approx reciprocal in the epilogue).
    out_f32 = multi_head_attention(q, k, v, params, num_heads=num_heads,
                                   compute_dtype=jnp.float32)
    out_f32 = jax.block_until_ready(out_f32)
    assert out_f32.shape == (B, S, d_model)
    assert jnp.allclose(out_f32, ref, atol=1e-2, rtol=1e-2), "f32 mismatch vs reference"

    print("KERNEL_OK")
</pallas_src>

<mosaic_0001>
module attributes {stable_mosaic.version = 11 : i64} {
  func.func @_linear_kernel(%arg0: i32, %arg1: memref<16x32xbf16, #tpu.memory_space<vmem>>, %arg2: memref<32x32xbf16, #tpu.memory_space<vmem>>, %arg3: memref<1x32xf32, #tpu.memory_space<vmem>>, %arg4: memref<16x32xbf16, #tpu.memory_space<vmem>>) attributes {dimension_semantics = [#tpu.dimension_semantics<parallel>], iteration_bounds = array<i64: 1>, scalar_prefetch = 0 : i64, scratch_operands = 0 : i64, tpu.core_type = #tpu.core_type<tc>, window_params = [{transform_indices = @transform_0, window_bounds = array<i64: 16, 32>}, {pipeline_mode = #tpu.pipeline_mode<synchronous>, transform_indices = @transform_1, window_bounds = array<i64: 32, 32>}, {pipeline_mode = #tpu.pipeline_mode<synchronous>, transform_indices = @transform_2, window_bounds = array<i64: 1, 32>}, {transform_indices = @transform_3, window_bounds = array<i64: 16, 32>}]} {
    %c0 = arith.constant 0 : index
    %c0_0 = arith.constant 0 : index
    %0 = vector.load %arg1[%c0, %c0_0] : memref<16x32xbf16, #tpu.memory_space<vmem>>, vector<16x32xbf16>
    %c0_1 = arith.constant 0 : index
    %c0_2 = arith.constant 0 : index
    %1 = vector.load %arg2[%c0_1, %c0_2] : memref<32x32xbf16, #tpu.memory_space<vmem>>, vector<32x32xbf16>
    %cst = arith.constant dense<0.000000e+00> : vector<16x32xf32>
    %2 = tpu.matmul %0, %1, %cst {dimension_numbers = #tpu.dot_dimension_numbers<[1], [0], [0], [1], [0, 0, 1, 1], [], []>} : vector<16x32xbf16>, vector<32x32xbf16>, vector<16x32xf32> -> vector<16x32xf32>
    %c0_3 = arith.constant 0 : index
    %c0_4 = arith.constant 0 : index
    %3 = vector.load %arg3[%c0_3, %c0_4] : memref<1x32xf32, #tpu.memory_space<vmem>>, vector<1x32xf32>
    %4 = vector.broadcast %3 : vector<1x32xf32> to vector<16x32xf32>
    %5 = arith.addf %2, %4 : vector<16x32xf32>
    %cst_5 = arith.constant 0.353553385 : f32
    %6 = vector.broadcast %cst_5 : f32 to vector<16x32xf32>
    %7 = arith.mulf %5, %6 : vector<16x32xf32>
    %8 = arith.truncf %7 : vector<16x32xf32> to vector<16x32xbf16>
    %c0_6 = arith.constant 0 : index
    %c0_7 = arith.constant 0 : index
    %9 = vector.load %arg4[%c0_6, %c0_7] : memref<16x32xbf16, #tpu.memory_space<vmem>>, vector<16x32xbf16>
    tpu.vector_store %arg4[%c0_6, %c0_7], %8 {strides = array<i32>} : memref<16x32xbf16, #tpu.memory_space<vmem>>, vector<16x32xbf16>,
    return
  }
  func.func @transform_0(%arg0: i32) -> (i32, i32) {
    %c0_i32 = arith.constant 0 : i32
    %c0_i32_0 = arith.constant 0 : i32
    return %arg0, %c0_i32 : i32, i32
  }
  func.func @transform_1(%arg0: i32) -> (i32, i32) {
    %c0_i32 = arith.constant 0 : i32
    %c0_i32_0 = arith.constant 0 : i32
    %c0_i32_1 = arith.constant 0 : i32
    return %c0_i32, %c0_i32_0 : i32, i32
  }
  func.func @transform_2(%arg0: i32) -> (i32, i32) {
    %c0_i32 = arith.constant 0 : i32
    %c0_i32_0 = arith.constant 0 : i32
    %c0_i32_1 = arith.constant 0 : i32
    return %c0_i32, %c0_i32_0 : i32, i32
  }
  func.func @transform_3(%arg0: i32) -> (i32, i32) {
    %c0_i32 = arith.constant 0 : i32
    %c0_i32_0 = arith.constant 0 : i32
    return %arg0, %c0_i32 : i32, i32
  }
}

</mosaic_0001>

<bundles_post_ra>
// kernel: tpu_custom_call.1
= control target key start
LH: loop header
LB: loop body
LE: loop exit
PB: predicated region body
PF: predicated region fallthrough
CT: control target
= control target key end

     0   :  { %8 = vsyncpa [#allocation3], 0  ;;  %s294_s0 = inlined_call_operand.hbm [shape: bf16[16,32], index: 0, kind: input, shape index: {}]   ;;  %s295_s1 = inlined_call_operand.hbm [shape: bf16[32,32], index: 1, kind: input, shape index: {}]   ;;  %s296_s2 = inlined_call_operand.vmem [shape: f32[1,32], index: 2, kind: input, shape index: {}]   ;;  %s297_s3 = inlined_call_operand.hbm [shape: bf16[16,32], index: 3, kind: output, shape index: {}]  }
   0x1   :  { %9 = vsyncpa [#allocation6], 0 }
   0x2   :  { %10 = vsyncpa [#allocation4], 0  ;;  %s246_s12 = smov [#allocation2]  }
   0x3   :  { %s16_s13 = sshll.u32 %s246_s12, 4  ;;  %s17_s13 = int_to_ptr.vmem [resolvable:$true] %s16_s13 }
   0x4   :  { %s188_s14 = scalar_lea.vmem %s17_s13, 128  ;;  %p193_p1 = scmp.lt.s32.totalorder %s17_s13, %s17_s13 }
   0x5   :  { %p189_p0 = scmp.ne.s32.totalorder %s17_s13, %s188_s14  ;;  %p194_p2 = scmp.lt.s32.totalorder %s188_s14, %s188_s14 }
   0x7   :  { %p195_p3 = por %p194_p2, %p193_p1 }
   0x9   :  { %p196_p4 = pnand %p195_p3, %p189_p0 }
   0xb   :  { %199 = shalt.err (!%p196_p4)
}
   0xc   :  { %s247_s15 = smov 64   ;;  %s248_s16 = smov 4  }
   0xd   :  { %22 = dma.hbm_to_vmem [thread:$0]  %s294_s0, 128, %s17_s13, [#allocation3], %s247_s15, %s247_s15, %s248_s16  }
   0xe   :  { %s249_s19 = smov [#allocation5]  }
   0xf   :  { %s28_s20 = sshll.u32 %s249_s19, 4  ;;  %s29_s20 = int_to_ptr.vmem [resolvable:$true] %s28_s20 }
  0x10   :  { %s208_s21 = scalar_lea.vmem %s29_s20, 256  ;;  %p213_p6 = scmp.lt.s32.totalorder %s29_s20, %s29_s20 }
  0x11   :  { %p209_p5 = scmp.ne.s32.totalorder %s29_s20, %s208_s21  ;;  %p214_p7 = scmp.lt.s32.totalorder %s208_s21, %s208_s21 }
  0x13   :  { %p215_p8 = por %p214_p7, %p213_p6 }
  0x15   :  { %p216_p9 = pnand %p215_p8, %p209_p5 }
  0x17   :  { %219 = shalt.err (!%p216_p9)
}
  0x18   :  { %34 = dma.hbm_to_vmem [thread:$0]  %s295_s1, 256, %s29_s20, [#allocation6], %s247_s15, %s247_s15, %s248_s16  }
  0x19   :  { %240 = dma.done.wait [#allocation3], 128  }
  0x1a   :  { %241 = vsyncadd [#allocation3], 4294967168 }
  0x1b   :  { %242 = dma.done.wait [#allocation6], 256  }
  0x1c   :  { %243 = vsyncadd [#allocation6], 4294967040  ;;  %v250_v0 = vmov 0.0   ;;  %vm251_vm0 = vmmov 0   ;;  %v177_v1 = vld [vmem:[#allocation5 + $0x8] sm:$0xff]   ;;  %v178_v2 = vld [vmem:[#allocation5] sm:$0xff]  }
  0x1d   :  { %162 = vmatprep.subr.bf16.mxu0 %v250_v0  ;;  %166 = vmatprep.mubr.msk.bf16.mxu0 %vm251_vm0, %v250_v0  ;;  %v179_v3 = vld [vmem:[#allocation2] sm:$0xff]   ;;  %vm74_vm1 = vcmask 261120   ;;  %vm129_vm2 = vcmask 257024   ;;  %s252_s1 = smov [#allocation7]  }
  0x1e   :  { %163 = vmatpush3.bf16.msra.mxu0 %v177_v1  ;;  %v150_v4 = vld [vmem:[%s296_s2] ss:$0 sm:$0xff]  ;;  %s137_s25 = sshll.u32 %s252_s1, 4  ;;  %s138_s25 = int_to_ptr.vmem [resolvable:$true] %s137_s25 }
  0x1f   :  { %164 = vmatprep.subr.bf16.mxu0 %v250_v0  ;;  %s220_s26 = scalar_lea.vmem %s138_s25, 128  ;;  %p225_p11 = scmp.lt.s32.totalorder %s138_s25, %s138_s25 }
  0x20   :  { %p221_p10 = scmp.ne.s32.totalorder %s138_s25, %s220_s26  ;;  %p226_p12 = scmp.lt.s32.totalorder %s220_s26, %s220_s26 }
  0x22   :  { %165 = vmatpush3.bf16.msra.mxu0 %v178_v2  ;;  %p227_p13 = por %p226_p12, %p225_p11 }
  0x24   :  { %p228_p0 = pnand %p227_p13, %p221_p10 }
  0x25   :  { %167 = vmatmul.mubr.msk.bf16.vlgmr.msra.gmra.mxu0 %vm74_vm1, %v179_v3 }
  0xe5   :  { %v112_v5 = vpop.f32.mrf.mxu0 }
  0xe6   :  { %v113_v6 = vadd.f32 %v150_v4, %v112_v5 }
  0xe7   :  { %v168_v7 = vpop.f32.mrf.mxu0 }
  0xe8   :  { %v119_v8 = vmul.f32 0.35355338, %v113_v6 }
  0xe9   :  { %v115_v9 = vpop.f32.mrf.mxu0 }
  0xea   :  { %v157_v10 = vpack.c.bf16 %v119_v8, %v119_v8  ;;  %v116_v11 = vadd.f32 %v150_v4, %v115_v9 }
  0xeb   :  { %v169_v12 = vpop.f32.mrf.mxu0 }
  0xec   :  { %v120_v13 = vmul.f32 0.35355338, %v116_v11  ;;  %130 = vst.msk [vmem:[#allocation7] sm:$0xf] %vm129_vm2, %v157_v10 }
  0xee   :  { %v158_v14 = vpack.c.bf16 %v120_v13, %v120_v13 }
  0xf0   :  { %131 = vst.msk [vmem:[#allocation7 + $0x4] sm:$0xf] %vm129_vm2, %v158_v14 }
  0xf1   :  { %231 = shalt.err (!%p228_p0)
}
  0xf2   :  { %143 = dma.vmem_to_hbm [thread:$0]  %s138_s25, 128, %s297_s3, [#allocation4], %s247_s15, %s247_s15, %s248_s16  }
  0xf3   :  { %244 = dma.done.wait [#allocation4], 128  }
  0xf4   :  { %245 = vsyncadd [#allocation4], 4294967168 }
  0xf5   :  { %147 = vsyncpa [#allocation3], 1 }
  0xf6   :  { %148 = vsyncpa [#allocation6], 1 }
  0xf7   :  { %149 = vsyncpa [#allocation4], 1 }

</bundles_post_ra>
